<compile_context>
chip_gen: v6e
topology: v6e:2x2x1
jax: 0.10.0
libtpu: 0.0.40
codegen_flags: <defaults>
</compile_context>

<pallas_src>
import jax
import jax.numpy as jnp
from jax.experimental import pallas as pl
from jax.experimental.pallas import tpu as pltpu


def _layernorm_kernel(x_ref, o_ref):
    # x_ref / o_ref: (TILE_ROWS, D) float32 tiles.
    x = x_ref[...]
    d = x.shape[-1]

    mean = jnp.mean(x, axis=-1, keepdims=True)           # (TILE_ROWS, 1)
    diff = x - mean
    # Unbiased variance (torch.var default): sum((x - mean)^2) / (D - 1)
    var = jnp.sum(diff * diff, axis=-1, keepdims=True) * jnp.float32(1.0 / (d - 1))

    # Reciprocal on the narrow column, then one broadcast multiply over the wide
    # slab.  Exact (not approx) so it matches the f32 reference tightly while
    # still avoiding a full-width f32 divide per vreg.
    inv_var = jnp.float32(1.0) / var                      # (TILE_ROWS, 1)

    # Matches the PyTorch module exactly: divide by the variance (not sqrt(var)).
    o_ref[...] = diff * inv_var


def _pick_row_tile(rows, d, target_bytes=1 << 20, max_rows=4096):
    """Largest row tile (multiple of 8, <= byte budget) that ideally divides `rows`."""
    # Max rows that keep one block within the byte budget (and a hard row cap).
    cap = (target_bytes // (d * 4)) // 8 * 8
    cap = max(8, min(max_rows, cap))

    if rows <= cap:
        # Full-extent block along the row axis is always a legal block dim.
        return rows

    # Prefer a tile that evenly divides the row count -> no masked trailing tile.
    t = cap
    while t >= 8:
        if rows % t == 0:
            return t
        t -= 8
    return cap  # fall back: Pallas masks the partial trailing tile.


def layer_normalization(x):
    """x: (B, S, D) float32 -> (B, S, D) float32, per-row (x - mean) / var(ddof=1)."""
    B, S, D = x.shape
    rows = B * S

    # Rows are independent (the reduction is only over D), so flatten to a
    # 2-D (rows, D) problem with a single 1-D grid over row tiles.
    x2 = x.reshape(rows, D)

    ts = _pick_row_tile(rows, D)
    grid = (pl.cdiv(rows, ts),)

    block_bytes = ts * D * 4
    # Double-buffered in + out (4x block) plus body temporaries (x, diff,
    # broadcasts ~ a few more blocks) with headroom; clamp to stay inside
    # v5e physical / v7x physical VMEM.
    vmem_limit = min(48 * 1024 * 1024, max(16 * 1024 * 1024, 12 * block_bytes))

    grid_spec = pltpu.PrefetchScalarGridSpec(
        num_scalar_prefetch=0,
        grid=grid,
        in_specs=[
            pl.BlockSpec((ts, D), lambda i: (i, 0)),
        ],
        out_specs=pl.BlockSpec((ts, D), lambda i: (i, 0)),
    )

    out2 = pl.pallas_call(
        _layernorm_kernel,
        out_shape=jax.ShapeDtypeStruct((rows, D), jnp.float32),
        grid_spec=grid_spec,
        compiler_params=pltpu.CompilerParams(
            # Single independent row-tile axis: no accumulator, no revisit.
            dimension_semantics=("parallel",),
            vmem_limit_bytes=int(vmem_limit),
        ),
    )(x2)

    return out2.reshape(B, S, D)


if __name__ == "__main__":
    key = jax.random.PRNGKey(0)

    # Small shapes consistent with the source transformer (embedding dim 128).
    B, S, D = 2, 16, 128
    x = jax.random.normal(key, (B, S, D), jnp.float32)

    out = layer_normalization(x)
    out = jax.block_until_ready(out)

    # Pure-JAX reference of the PyTorch forward semantics.
    mean = jnp.mean(x, axis=2, keepdims=True)
    var = jnp.var(x, axis=2, ddof=1, keepdims=True)   # unbiased, like torch.var
    ref = (x - mean) / var

    assert out.shape == (B, S, D)
    assert jnp.allclose(out, ref, atol=1e-4, rtol=1e-4), "mismatch vs reference"

    print("KERNEL_OK")
</pallas_src>

<mosaic_0001>
module attributes {stable_mosaic.version = 11 : i64} {
  func.func @_layernorm_kernel(%arg0: i32, %arg1: memref<32x128xf32, #tpu.memory_space<vmem>>, %arg2: memref<32x128xf32, #tpu.memory_space<vmem>>) attributes {dimension_semantics = [#tpu.dimension_semantics<parallel>], iteration_bounds = array<i64: 1>, scalar_prefetch = 0 : i64, scratch_operands = 0 : i64, tpu.core_type = #tpu.core_type<tc>, window_params = [{transform_indices = @transform_0, window_bounds = array<i64: 32, 128>}, {transform_indices = @transform_1, window_bounds = array<i64: 32, 128>}]} {
    %c0 = arith.constant 0 : index
    %c0_0 = arith.constant 0 : index
    %0 = vector.load %arg1[%c0, %c0_0] : memref<32x128xf32, #tpu.memory_space<vmem>>, vector<32x128xf32>
    %cst = arith.constant dense<0.000000e+00> : vector<32xf32>
    %1 = vector.multi_reduction <add>, %0, %cst [1] : vector<32x128xf32> to vector<32xf32>
    %2 = vector.shape_cast %1 : vector<32xf32> to vector<32x1xf32>
    %cst_1 = arith.constant 1.280000e+02 : f32
    %3 = vector.broadcast %cst_1 : f32 to vector<32x1xf32>
    %4 = arith.divf %2, %3 : vector<32x1xf32>
    %5 = vector.broadcast %4 : vector<32x1xf32> to vector<32x128xf32>
    %6 = arith.subf %0, %5 : vector<32x128xf32>
    %7 = arith.mulf %6, %6 : vector<32x128xf32>
    %cst_2 = arith.constant dense<0.000000e+00> : vector<32xf32>
    %8 = vector.multi_reduction <add>, %7, %cst_2 [1] : vector<32x128xf32> to vector<32xf32>
    %9 = vector.shape_cast %8 : vector<32xf32> to vector<32x1xf32>
    %cst_3 = arith.constant 0.00787401571 : f32
    %10 = vector.broadcast %cst_3 : f32 to vector<32x1xf32>
    %11 = arith.mulf %9, %10 : vector<32x1xf32>
    %cst_4 = arith.constant 1.000000e+00 : f32
    %12 = vector.broadcast %cst_4 : f32 to vector<32x1xf32>
    %13 = arith.divf %12, %11 : vector<32x1xf32>
    %14 = vector.broadcast %13 : vector<32x1xf32> to vector<32x128xf32>
    %15 = arith.mulf %6, %14 : vector<32x128xf32>
    %c0_5 = arith.constant 0 : index
    %c0_6 = arith.constant 0 : index
    %16 = vector.load %arg2[%c0_5, %c0_6] : memref<32x128xf32, #tpu.memory_space<vmem>>, vector<32x128xf32>
    tpu.vector_store %arg2[%c0_5, %c0_6], %15 {strides = array<i32>} : memref<32x128xf32, #tpu.memory_space<vmem>>, vector<32x128xf32>,
    return
  }
  func.func @transform_0(%arg0: i32) -> (i32, i32) {
    %c0_i32 = arith.constant 0 : i32
    %c0_i32_0 = arith.constant 0 : i32
    return %arg0, %c0_i32 : i32, i32
  }
  func.func @transform_1(%arg0: i32) -> (i32, i32) {
    %c0_i32 = arith.constant 0 : i32
    %c0_i32_0 = arith.constant 0 : i32
    return %arg0, %c0_i32 : i32, i32
  }
}

</mosaic_0001>

<bundles_post_ra>
// kernel: tpu_custom_call.1
= control target key start
LH: loop header
LB: loop body
LE: loop exit
PB: predicated region body
PF: predicated region fallthrough
CT: control target
= control target key end

     0   :  { %6 = vsyncpa [#allocation3], 0  ;;  %s175_s0 = inlined_call_operand.hbm [shape: f32[32,128], index: 0, kind: input, shape index: {}]   ;;  %s176_s1 = inlined_call_operand.hbm [shape: f32[32,128], index: 1, kind: output, shape index: {}]  }
   0x1   :  { %7 = vsyncpa [#allocation4], 0  ;;  %s149_s6 = smov [#allocation2]  }
   0x2   :  { %s13_s7 = sshll.u32 %s149_s6, 4  ;;  %s14_s7 = int_to_ptr.vmem [resolvable:$true] %s13_s7 }
   0x3   :  { %s113_s8 = scalar_lea.vmem %s14_s7, 512  ;;  %p118_p1 = scmp.lt.s32.totalorder %s14_s7, %s14_s7 }
   0x4   :  { %p114_p0 = scmp.ne.s32.totalorder %s14_s7, %s113_s8  ;;  %p119_p2 = scmp.lt.s32.totalorder %s113_s8, %s113_s8 }
   0x6   :  { %p120_p3 = por %p119_p2, %p118_p1 }
   0x8   :  { %p121_p4 = pnand %p120_p3, %p114_p0 }
   0xa   :  { %124 = shalt.err (!%p121_p4)
}
   0xb   :  { %s150_s9 = smov 128   ;;  %s151_s10 = smov 8  }
   0xc   :  { %19 = dma.hbm_to_vmem [thread:$0]  %s175_s0, 512, %s14_s7, [#allocation3], %s150_s9, %s150_s9, %s151_s10  }
   0xd   :  { %145 = dma.done.wait [#allocation3], 512  }
   0xe   :  { %146 = vsyncadd [#allocation3], 4294966784  ;;  %v23_v0 = vld [vmem:[#allocation2] sm:$0xff]  ;;  %v25_v1 = vld [vmem:[#allocation2 + $0x10] sm:$0xff]  ;;  %s152_s0 = smov [#allocation5]  }
   0xf   :  { %27 = vadd.xlane.f32.xlu0 %v23_v0  ;;  %31 = vadd.xlane.f32.xlu1 %v25_v1  ;;  %v24_v2 = vld [vmem:[#allocation2 + $0x8] sm:$0xff]  ;;  %v26_v3 = vld [vmem:[#allocation2 + $0x18] sm:$0xff]  ;;  %s81_s13 = sshll.u32 %s152_s0, 4  ;;  %s82_s13 = int_to_ptr.vmem [resolvable:$true] %s81_s13 }
  0x10   :  { %s125_s14 = scalar_lea.vmem %s82_s13, 512  ;;  %p130_p6 = scmp.lt.s32.totalorder %s82_s13, %s82_s13 }
  0x11   :  { %p126_p5 = scmp.ne.s32.totalorder %s82_s13, %s125_s14  ;;  %p131_p7 = scmp.lt.s32.totalorder %s125_s14, %s125_s14 }
  0x13   :  { %29 = vadd.xlane.f32.xlu0 %v24_v2  ;;  %33 = vadd.xlane.f32.xlu1 %v26_v3  ;;  %p132_p8 = por %p131_p7, %p130_p6 }
  0x15   :  { %p133_p9 = pnand %p132_p8, %p126_p5 }
  0x98   :  { %v28_v4 = vpop.xlane.xlu0 %27  ;;  %v32_v5 = vpop.xlane.xlu1 %31 }
  0x99   :  { %v36_v6 = vmul.f32 0.0078125, %v28_v4  ;;  %v38_v7 = vmul.f32 0.0078125, %v32_v5 }
  0x9b   :  { %v40_v8 = vsub.f32 %v23_v0, %v36_v6  ;;  %v42_v9 = vsub.f32 %v25_v1, %v38_v7 }
  0x9c   :  { %v30_v10 = vpop.xlane.xlu0 %29  ;;  %v34_v11 = vpop.xlane.xlu1 %33 }
  0x9d   :  { %v37_v12 = vmul.f32 0.0078125, %v30_v10  ;;  %v44_v13 = vmul.f32 %v40_v8, %v40_v8  ;;  %v39_v14 = vmul.f32 0.0078125, %v34_v11  ;;  %v46_v17 = vmul.f32 %v42_v9, %v42_v9 }
  0x9f   :  { %v41_v15 = vsub.f32 %v24_v2, %v37_v12  ;;  %48 = vadd.xlane.f32.xlu0 %v44_v13  ;;  %v43_v16 = vsub.f32 %v26_v3, %v39_v14 }
  0xa1   :  { %v45_v18 = vmul.f32 %v41_v15, %v41_v15  ;;  %v47_v19 = vmul.f32 %v43_v16, %v43_v16 }
  0xa3   :  { %52 = vadd.xlane.f32.xlu0 %v46_v17  ;;  %50 = vadd.xlane.f32.xlu1 %v45_v18 }
  0xa7   :  { %54 = vadd.xlane.f32.xlu1 %v47_v19 }
 0x128   :  { %v49_v20 = vpop.xlane.xlu0 %48 }
 0x129   :  { %v56_v21 = vmul.f32 0.007874016, %v49_v20 }
 0x12b   :  { %97 = vrcp.f32 %v56_v21 }
 0x12c   :  { %v51_v22 = vpop.xlane.xlu1 %50  ;;  %v53_v23 = vpop.xlane.xlu0 %52 }
 0x12d   :  { %v57_v24 = vmul.f32 0.007874016, %v51_v22  ;;  %v58_v25 = vmul.f32 0.007874016, %v53_v23 }
 0x12f   :  { %99 = vrcp.f32 %v57_v24 }
 0x130   :  { %101 = vrcp.f32 %v58_v25  ;;  %v55_v26 = vpop.xlane.xlu1 %54 }
 0x131   :  { %v59_v27 = vmul.f32 0.007874016, %v55_v26 }
 0x133   :  { %103 = vrcp.f32 %v59_v27 }
 0x138   :  { %v98_v28 = vpop.eup %97 }
 0x139   :  { %v68_v29 = vmul.f32 %v98_v28, %v40_v8 }
 0x13b   :  { %72 = vst [vmem:[#allocation5] sm:$0xff] %v68_v29 }
 0x13c   :  { %v100_v30 = vpop.eup %99 }
 0x13d   :  { %v102_v31 = vpop.eup %101  ;;  %v69_v32 = vmul.f32 %v100_v30, %v41_v15 }
 0x13e   :  { %v70_v33 = vmul.f32 %v102_v31, %v42_v9 }
 0x13f   :  { %73 = vst [vmem:[#allocation5 + $0x8] sm:$0xff] %v69_v32 }
 0x140   :  { %v104_v34 = vpop.eup %103  ;;  %74 = vst [vmem:[#allocation5 + $0x10] sm:$0xff] %v70_v33 }
 0x141   :  { %v71_v35 = vmul.f32 %v104_v34, %v43_v16 }
 0x143   :  { %75 = vst [vmem:[#allocation5 + $0x18] sm:$0xff] %v71_v35 }
 0x144   :  { %136 = shalt.err (!%p133_p9)
}
 0x145   :  { %87 = dma.vmem_to_hbm [thread:$0]  %s82_s13, 512, %s176_s1, [#allocation4], %s150_s9, %s150_s9, %s151_s10  }
 0x146   :  { %147 = dma.done.wait [#allocation4], 512  }
 0x147   :  { %148 = vsyncadd [#allocation4], 4294966784 }
 0x148   :  { %91 = vsyncpa [#allocation3], 1 }
 0x149   :  { %92 = vsyncpa [#allocation4], 1 }

</bundles_post_ra>
